<compile_context>
chip_gen: v7x
topology: tpu7x:2x2x1
jax: 0.10.0
libtpu: 0.0.40
codegen_flags: <defaults>
</compile_context>

<pallas_src>
import functools

import jax
import jax.numpy as jnp
from jax.experimental import pallas as pl
from jax.experimental.pallas import tpu as pltpu


def sat_kernel(x_full_ref, x_cols_ref, w_all_ref, bs_ref, vs_ref, out_ref, *,
               n_valid, t):
    # x_full_ref : (block_b, F*T, N_pad)    -- full vertex axis (for lhs)
    # x_cols_ref : (block_b, F*T, block_n)  -- column tile of vertex axis (for rhs)
    # w_all_ref  : (2T, F*T)  rows [:T] = folded W1*W2, rows [T:] = W3 expansion
    # bs_ref     : (N_pad, block_n)  zero-padded, column tile
    # vs_ref     : (N_rows, N_pad)   zero-padded, rows trimmed to round_up(N, 8)
    # out_ref    : (block_b, N_rows, block_n)
    f32 = jnp.float32
    bf16 = jnp.bfloat16

    w_all = w_all_ref[...]
    w_lhs = w_all[:t]                    # (T, F*T)
    w_rhs = w_all[t:]                    # (T, F*T)
    bs = bs_ref[...]                     # (N_pad, block_n)
    vs_b = vs_ref[...].astype(bf16)      # (N_rows, N_pad), hoisted bf16 cast

    n_rows = vs_ref.shape[0]
    block_n = bs.shape[1]
    block_b = x_full_ref.shape[0]

    # Rows >= n_valid are padding; exclude them from the axis-0 softmax.
    row_valid = jax.lax.broadcasted_iota(jnp.int32, (n_rows, block_n), 0) < n_valid
    neg_big = jnp.float32(-1e30)

    def body(i, carry):
        x_f = x_full_ref[i]                                              # (F*T, N_pad)
        x_c = x_cols_ref[i]                                              # (F*T, block_n)

        # Projections: single K = F*T contraction each, lane-dense in N.
        lhs_t = jnp.dot(w_lhs, x_f, preferred_element_type=f32)          # (T, N_pad)
        rhs_t = jnp.dot(w_rhs, x_c, preferred_element_type=f32)          # (T, block_n)

        # product[i, j] = sum_t lhs[i, t] * rhs[t, j]  (contract dim 0 of both)
        product = jax.lax.dot_general(
            lhs_t, rhs_t, (((0,), (0,)), ((), ())),
            preferred_element_type=f32)                                  # (N_pad, block_n)

        # TODO(synk): if bundle dumps show the single EUP as the binding slot
        # on v6e/v7x, switch sigmoid to 0.5*(1+tanh(x/2)).
        sig = jax.nn.sigmoid(product + bs)                               # (N_pad, block_n)

        # Dominant O(N^3) term: bf16 inputs on the MXU, f32 accumulate.
        s = jnp.dot(vs_b, sig.astype(bf16),
                    preferred_element_type=f32)                          # (N_rows, block_n)

        # softmax over dim=1 of (B, N, N) == axis 0 here; padded rows masked.
        s = jnp.where(row_valid, s, neg_big)
        m = jnp.max(s, axis=0, keepdims=True)
        e = jnp.where(row_valid, jnp.exp(s - m), 0.0)
        denom = jnp.sum(e, axis=0, keepdims=True)
        out_ref[i] = e * pl.reciprocal(denom, approx=True)
        return carry

    jax.lax.fori_loop(0, block_b, body, 0)


def sat_forward(x, w1, w2, w3, bs, vs, *, block_b=None, block_n=None):
    """x: (B, N, F, T); w1: (T,); w2: (F, T); w3: (F,); bs: (1, N, N); vs: (N, N)."""
    B, N, F_, T_ = x.shape
    FT = F_ * T_
    f32 = jnp.float32

    N_pad = pl.cdiv(N, 128) * 128      # lane-padded vertex axis (columns / contraction)
    N_rows = pl.cdiv(N, 8) * 8         # sublane-padded output row axis (trim writeback)

    # Column (lane) tile: full if small, else a 128-multiple divisor <= 512.
    if block_n is None:
        if N_pad <= 512:
            block_n = N_pad
        else:
            block_n = next(c for c in (512, 384, 256, 128) if N_pad % c == 0)
    num_n_steps = N_pad // block_n

    # VMEM accounting (bytes): double-buffered pipelined operands + loop temporaries.
    fixed_bytes = 4 * (2 * N_rows * N_pad          # Vs (x2 buffers)
                       + 2 * N_pad * block_n       # bs (x2 buffers)
                       + 6 * N_pad * block_n       # product/sig/e/... temporaries
                       + 2 * 2 * T_ * FT)          # folded weights
    per_b_bytes = 4 * (2 * N_rows * block_n        # output (x2 buffers)
                       + 2 * FT * N_pad            # x full-N slab (x2 buffers)
                       + 2 * FT * block_n)         # x column slab (x2 buffers)

    if block_b is None:
        budget = 40 * 1024 * 1024   # conservative: v7x has 64 MiB physical VMEM
        cap = max(1, (budget - fixed_bytes) // per_b_bytes)
        block_b = int(max(1, min(8, B, cap)))
        # Keep >= 2 grid steps so the parallel axes can shard across v7x's 2 TCs.
        if num_n_steps * pl.cdiv(B, block_b) < 2:
            block_b = max(1, pl.cdiv(B, 2))

    num_b_steps = pl.cdiv(B, block_b)
    B_pad = num_b_steps * block_b

    vmem_limit = int(min(48 * 1024 * 1024,
                         max(32 * 1024 * 1024,
                             2 * (fixed_bytes + per_b_bytes * block_b))))

    x = x.astype(f32)
    w1 = w1.astype(f32)
    w2 = w2.astype(f32)
    w3 = w3.astype(f32)

    # Fold W1 into W2:  W_lhs[t', f*T+t] = w1[t] * w2[f, t']      (T, F*T)
    w_lhs = jnp.einsum('t,fs->sft', w1, w2).reshape(T_, FT)
    # Expand W3:        W_rhs[t, f*T+t'] = w3[f] * delta(t, t')   (T, F*T)
    w_rhs = jnp.einsum('f,ts->tfs', w3, jnp.eye(T_, dtype=f32)).reshape(T_, FT)
    w_all = jnp.concatenate([w_lhs, w_rhs], axis=0)                # (2T, F*T)

    # Layout: N on lanes.  x (B, N, F, T) -> (B, F*T, N), pad N -> N_pad, B -> B_pad.
    xt = jnp.transpose(x, (0, 2, 3, 1)).reshape(B, FT, N)
    xt = jnp.pad(xt, ((0, B_pad - B), (0, 0), (0, N_pad - N)))

    bs_p = jnp.pad(bs[0].astype(f32), ((0, N_pad - N), (0, N_pad - N)))
    vs_p = jnp.pad(vs.astype(f32), ((0, N_rows - N), (0, N_pad - N)))

    kernel = functools.partial(sat_kernel, n_valid=N, t=T_)

    out = pl.pallas_call(
        kernel,
        out_shape=jax.ShapeDtypeStruct((B_pad, N_rows, N_pad), f32),
        grid=(num_b_steps, num_n_steps),
        in_specs=[
            pl.BlockSpec((block_b, FT, N_pad), lambda b, n: (b, 0, 0)),    # x, full N (lhs)
            pl.BlockSpec((block_b, FT, block_n), lambda b, n: (b, 0, n)),  # x, col tile (rhs)
            pl.BlockSpec((2 * T_, FT), lambda b, n: (0, 0)),               # folded weights
            pl.BlockSpec((N_pad, block_n), lambda b, n: (0, n)),           # bs column tile
            pl.BlockSpec((N_rows, N_pad), lambda b, n: (0, 0)),            # Vs (rows trimmed)
        ],
        out_specs=pl.BlockSpec((block_b, N_rows, block_n), lambda b, n: (b, 0, n)),
        compiler_params=pltpu.CompilerParams(
            dimension_semantics=("parallel", "parallel"),
            vmem_limit_bytes=vmem_limit),
    )(xt, xt, w_all, bs_p, vs_p)

    # TODO(synk): this slice re-materializes (B, N, N) in HBM; fuse downstream
    # consumers with the padded output instead in production.
    return out[:B, :N, :N]


def sat_reference(x, w1, w2, w3, bs, vs):
    # Pure-JAX reference mirroring the PyTorch forward (f32).
    lhs = jnp.einsum('bnft,t->bnf', x, w1)
    lhs = jnp.einsum('bnf,ft->bnt', lhs, w2)
    rhs = jnp.einsum('f,bnft->bnt', w3, x)                    # (B, N, T)
    product = jnp.einsum('bnt,bmt->bnm', lhs, rhs)            # lhs @ rhs.T
    S = jnp.einsum('nm,bmk->bnk', vs, jax.nn.sigmoid(product + bs))
    return jax.nn.softmax(S, axis=1)


if __name__ == "__main__":
    # Small shapes consistent with the module: inputs=F, vertices=N, timesteps=T
    B, N, F, T = 2, 16, 4, 8

    key = jax.random.PRNGKey(0)
    kx, k1, k2, k3, kb, kv = jax.random.split(key, 6)

    x = jax.random.normal(kx, (B, N, F, T), dtype=jnp.float32)

    # Deterministic parameter init (module leaves them uninitialized; small
    # scaled normals keep sigmoid/softmax in a sane range).  Shapes match the
    # PyTorch parameters exactly.
    w1 = 0.1 * jax.random.normal(k1, (T,), dtype=jnp.float32)        # W1: (timesteps,)
    w2 = 0.1 * jax.random.normal(k2, (F, T), dtype=jnp.float32)      # W2: (inputs, timesteps)
    w3 = 0.1 * jax.random.normal(k3, (F,), dtype=jnp.float32)        # W3: (inputs,)
    bs = 0.1 * jax.random.normal(kb, (1, N, N), dtype=jnp.float32)   # bs: (1, vertices, vertices)
    vs = 0.1 * jax.random.normal(kv, (N, N), dtype=jnp.float32)      # Vs: (vertices, vertices)

    out = sat_forward(x, w1, w2, w3, bs, vs)
    out = jax.block_until_ready(out)

    ref = sat_reference(x, w1, w2, w3, bs, vs)
    assert out.shape == (B, N, N)
    # Tolerance accounts for the bf16 MXU matmul (f32 accumulate) on the
    # dominant term and the approximate EUP reciprocal in the softmax divide.
    assert jnp.allclose(out, ref, atol=1e-2, rtol=1e-2), "mismatch vs reference"

    print("KERNEL_OK")
</pallas_src>

<mosaic_0001>
module attributes {stable_mosaic.version = 11 : i64} {
  func.func @sat_kernel(%arg0: i32, %arg1: i32, %arg2: memref<1x32x128xf32, #tpu.memory_space<vmem>>, %arg3: memref<1x32x128xf32, #tpu.memory_space<vmem>>, %arg4: memref<16x32xf32, #tpu.memory_space<vmem>>, %arg5: memref<128x128xf32, #tpu.memory_space<vmem>>, %arg6: memref<16x128xf32, #tpu.memory_space<vmem>>, %arg7: memref<1x16x128xf32, #tpu.memory_space<vmem>>) attributes {dimension_semantics = [#tpu.dimension_semantics<parallel>, #tpu.dimension_semantics<parallel>], iteration_bounds = array<i64: 2, 1>, scalar_prefetch = 0 : i64, scratch_operands = 0 : i64, tpu.core_type = #tpu.core_type<tc>, window_params = [{transform_indices = @transform_0, window_bounds = array<i64: 1, 32, 128>}, {transform_indices = @transform_1, window_bounds = array<i64: 1, 32, 128>}, {pipeline_mode = #tpu.pipeline_mode<synchronous>, transform_indices = @transform_2, window_bounds = array<i64: 16, 32>}, {transform_indices = @transform_3, window_bounds = array<i64: 128, 128>}, {pipeline_mode = #tpu.pipeline_mode<synchronous>, transform_indices = @transform_4, window_bounds = array<i64: 16, 128>}, {transform_indices = @transform_5, window_bounds = array<i64: 1, 16, 128>}]} {
    %c0 = arith.constant 0 : index
    %c0_0 = arith.constant 0 : index
    %0 = vector.load %arg4[%c0, %c0_0] : memref<16x32xf32, #tpu.memory_space<vmem>>, vector<16x32xf32>
    %1 = vector.extract_strided_slice %0 {offsets = [0, 0], sizes = [8, 32], strides = [1, 1]} : vector<16x32xf32> to vector<8x32xf32>
    %2 = vector.extract_strided_slice %0 {offsets = [8, 0], sizes = [8, 32], strides = [1, 1]} : vector<16x32xf32> to vector<8x32xf32>
    %c0_1 = arith.constant 0 : index
    %c0_2 = arith.constant 0 : index
    %3 = vector.load %arg5[%c0_1, %c0_2] : memref<128x128xf32, #tpu.memory_space<vmem>>, vector<128x128xf32>
    %c0_3 = arith.constant 0 : index
    %c0_4 = arith.constant 0 : index
    %4 = vector.load %arg6[%c0_3, %c0_4] : memref<16x128xf32, #tpu.memory_space<vmem>>, vector<16x128xf32>
    %5 = arith.truncf %4 : vector<16x128xf32> to vector<16x128xbf16>
    %6 = tpu.iota {dimensions = array<i32: 0>} : vector<16x128xi32>
    %c16_i32 = arith.constant 16 : i32
    %7 = vector.broadcast %c16_i32 : i32 to vector<16x128xi32>
    %8 = arith.cmpi slt, %6, %7 : vector<16x128xi32>
    %cst = arith.constant -1.000000e+30 : f32
    %c0_i32 = arith.constant 0 : i32
    %9 = arith.index_cast %c0_i32 : i32 to index
    %c0_5 = arith.constant 0 : index
    %c0_6 = arith.constant 0 : index
    %10 = vector.load %arg2[%9, %c0_5, %c0_6] : memref<1x32x128xf32, #tpu.memory_space<vmem>>, vector<1x32x128xf32>
    %11 = vector.shape_cast %10 : vector<1x32x128xf32> to vector<32x128xf32>
    %12 = arith.index_cast %c0_i32 : i32 to index
    %c0_7 = arith.constant 0 : index
    %c0_8 = arith.constant 0 : index
    %13 = vector.load %arg3[%12, %c0_7, %c0_8] : memref<1x32x128xf32, #tpu.memory_space<vmem>>, vector<1x32x128xf32>
    %14 = vector.shape_cast %13 : vector<1x32x128xf32> to vector<32x128xf32>
    %cst_9 = arith.constant dense<0.000000e+00> : vector<8x128xf32>
    %15 = tpu.matmul %1, %11, %cst_9 {dimension_numbers = #tpu.dot_dimension_numbers<[1], [0], [0], [1], [0, 0, 1, 1], [], []>} : vector<8x32xf32>, vector<32x128xf32>, vector<8x128xf32> -> vector<8x128xf32>
    %cst_10 = arith.constant dense<0.000000e+00> : vector<8x128xf32>
    %16 = tpu.matmul %2, %14, %cst_10 {dimension_numbers = #tpu.dot_dimension_numbers<[1], [0], [0], [1], [0, 0, 1, 1], [], []>} : vector<8x32xf32>, vector<32x128xf32>, vector<8x128xf32> -> vector<8x128xf32>
    %cst_11 = arith.constant dense<0.000000e+00> : vector<128x128xf32>
    %17 = tpu.matmul %15, %16, %cst_11 {dimension_numbers = #tpu.dot_dimension_numbers<[0], [0], [1], [1], [0, 1, 1, 1], [], []>} : vector<8x128xf32>, vector<8x128xf32>, vector<128x128xf32> -> vector<128x128xf32>
    %18 = arith.addf %17, %3 : vector<128x128xf32>
    %19 = arith.negf %18 : vector<128x128xf32>
    %20 = math.exp %19 : vector<128x128xf32>
    %cst_12 = arith.constant 1.000000e+00 : f32
    %21 = vector.broadcast %cst_12 : f32 to vector<128x128xf32>
    %22 = arith.addf %21, %20 : vector<128x128xf32>
    %23 = arith.divf %21, %22 : vector<128x128xf32>
    %24 = arith.truncf %23 : vector<128x128xf32> to vector<128x128xbf16>
    %cst_13 = arith.constant dense<0.000000e+00> : vector<16x128xf32>
    %25 = tpu.matmul %5, %24, %cst_13 {dimension_numbers = #tpu.dot_dimension_numbers<[1], [0], [0], [1], [0, 0, 1, 1], [], []>} : vector<16x128xbf16>, vector<128x128xbf16>, vector<16x128xf32> -> vector<16x128xf32>
    %26 = vector.broadcast %cst : f32 to vector<16x128xf32>
    %27 = arith.select %8, %25, %26 : vector<16x128xi1>, vector<16x128xf32>
    %cst_14 = arith.constant dense<0xFF800000> : vector<128xf32>
    %28 = vector.multi_reduction <maximumf>, %27, %cst_14 [0] : vector<16x128xf32> to vector<128xf32>
    %29 = vector.shape_cast %28 : vector<128xf32> to vector<1x128xf32>
    %30 = vector.broadcast %29 : vector<1x128xf32> to vector<16x128xf32>
    %31 = arith.subf %27, %30 : vector<16x128xf32>
    %32 = math.exp %31 : vector<16x128xf32>
    %cst_15 = arith.constant 0.000000e+00 : f32
    %33 = vector.broadcast %cst_15 : f32 to vector<16x128xf32>
    %34 = arith.select %8, %32, %33 : vector<16x128xi1>, vector<16x128xf32>
    %cst_16 = arith.constant dense<0.000000e+00> : vector<128xf32>
    %35 = vector.multi_reduction <add>, %34, %cst_16 [0] : vector<16x128xf32> to vector<128xf32>
    %36 = vector.shape_cast %35 : vector<128xf32> to vector<1x128xf32>
    %37 = tpu.reciprocal %36 {approx = true} : vector<1x128xf32> -> vector<1x128xf32>
    %38 = vector.broadcast %37 : vector<1x128xf32> to vector<16x128xf32>
    %39 = arith.mulf %34, %38 : vector<16x128xf32>
    %40 = arith.index_cast %c0_i32 : i32 to index
    %c0_17 = arith.constant 0 : index
    %c0_18 = arith.constant 0 : index
    %41 = vector.load %arg7[%40, %c0_17, %c0_18] : memref<1x16x128xf32, #tpu.memory_space<vmem>>, vector<1x16x128xf32>
    %42 = vector.shape_cast %41 : vector<1x16x128xf32> to vector<16x128xf32>
    %43 = vector.shape_cast %39 : vector<16x128xf32> to vector<1x16x128xf32>
    tpu.vector_store %arg7[%40, %c0_17, %c0_18], %43 {strides = array<i32>} : memref<1x16x128xf32, #tpu.memory_space<vmem>>, vector<1x16x128xf32>,
    %c1_i32 = arith.constant 1 : i32
    return
  }
  func.func @transform_0(%arg0: i32, %arg1: i32) -> (i32, i32, i32) {
    %c0_i32 = arith.constant 0 : i32
    %c0_i32_0 = arith.constant 0 : i32
    %c0_i32_1 = arith.constant 0 : i32
    return %arg0, %c0_i32, %c0_i32_0 : i32, i32, i32
  }
  func.func @transform_1(%arg0: i32, %arg1: i32) -> (i32, i32, i32) {
    %c0_i32 = arith.constant 0 : i32
    %c0_i32_0 = arith.constant 0 : i32
    return %arg0, %c0_i32, %arg1 : i32, i32, i32
  }
  func.func @transform_2(%arg0: i32, %arg1: i32) -> (i32, i32) {
    %c0_i32 = arith.constant 0 : i32
    %c0_i32_0 = arith.constant 0 : i32
    %c0_i32_1 = arith.constant 0 : i32
    return %c0_i32, %c0_i32_0 : i32, i32
  }
  func.func @transform_3(%arg0: i32, %arg1: i32) -> (i32, i32) {
    %c0_i32 = arith.constant 0 : i32
    %c0_i32_0 = arith.constant 0 : i32
    return %c0_i32, %arg1 : i32, i32
  }
  func.func @transform_4(%arg0: i32, %arg1: i32) -> (i32, i32) {
    %c0_i32 = arith.constant 0 : i32
    %c0_i32_0 = arith.constant 0 : i32
    %c0_i32_1 = arith.constant 0 : i32
    return %c0_i32, %c0_i32_0 : i32, i32
  }
  func.func @transform_5(%arg0: i32, %arg1: i32) -> (i32, i32, i32) {
    %c0_i32 = arith.constant 0 : i32
    %c0_i32_0 = arith.constant 0 : i32
    return %arg0, %c0_i32, %arg1 : i32, i32, i32
  }
}

</mosaic_0001>

<bundles_post_ra>
// kernel: tpu_custom_call.1
= control target key start
LH: loop header
LB: loop body
LE: loop exit
PB: predicated region body
PF: predicated region fallthrough
CT: control target
= control target key end

     0   :  { %s2085_s0 = inlined_call_operand.hbm [shape: f32[2,32,128], index: 0, kind: input, shape index: {}]   ;;  %s2086_s1 = inlined_call_operand.hbm [shape: f32[2,32,128], index: 1, kind: input, shape index: {}]   ;;  %s2087_s2 = inlined_call_operand.hbm [shape: f32[16,32], index: 2, kind: input, shape index: {}]   ;;  %s2088_s3 = inlined_call_operand.hbm [shape: f32[128,128], index: 3, kind: input, shape index: {}]   ;;  %s2089_s4 = inlined_call_operand.hbm [shape: f32[16,128], index: 4, kind: input, shape index: {}]   ;;  %s2090_s5 = inlined_call_operand.hbm [shape: f32[2,16,128], index: 5, kind: output, shape index: {}]  }
   0x1   :  { %2099 = sst [smem:[#allocation18_spill]] %s2085_s0 }
   0x2   :  { %2100 = sst [smem:[#allocation19_spill]] %s2087_s2 }
   0x3   :  { %2101 = sst [smem:[#allocation20_spill]] %s2088_s3 }
   0x4   :  { %10 = vsyncpa [#allocation3], 0 }
   0x5   :  { %12 = vsyncpa [#allocation3 + $0x1], 0 }
   0x6   :  { %13 = vsyncpa [#allocation6], 0 }
   0x7   :  { %15 = vsyncpa [#allocation6 + $0x1], 0 }
   0x8   :  { %16 = vsyncpa [#allocation9], 0 }
   0x9   :  { %17 = vsyncpa [#allocation4], 0 }
   0xa   :  { %19 = vsyncpa [#allocation4 + $0x1], 0  ;;  %s1721_s18 = smov 0   ;;  %s1723_s19 = smov 0  }
   0xb   :  { %s1725_s20 = smov 0   ;;  %s1727_s21 = smov 0  }
   0xc   :  { %s1729_s22 = smov 0   ;;  %s1731_s23 = smov 0  }
   0xd LB: > { %s1752_s24 = sadd.s32 4294967295, %s1676_s23   ;;  %s1086_s25 = sadd.s32 4294967294, %s1676_s23   ;;  %s1676_s23 = sphi %s1731_s23, %s25_s23   ;;  %s1672_s22 = sphi %s1729_s22, %s2129_s22   ;;  %s1668_s21 = sphi %s1727_s21, %s2128_s21   ;;  %s1664_s20 = sphi %s1725_s20, %s2127_s20   ;;  %s1660_s19 = sphi %s1723_s19, %s2126_s19   ;;  %s1656_s18 = sphi %s1721_s18, %s2125_s18  }
   0xe   : > { %p57_p0 = scmp.ne.s32.totalorder %s1660_s19, %s1656_s18  ;;  %p2091_p1 = scmp.eq.s32.totalorder %s1752_s24, 0 }
   0xf   : > { %p185_p3 = scmp.eq.s32.totalorder %s1086_s25, 1  ;;  %p1087_p5 = scmp.ge.s32.totalorder %s1676_s23, 1 }
  0x10   : > { %p1761_p4 = por %p2091_p1, %p57_p0  ;;  %p192_p7 = scmp.lt.s32.totalorder %s1676_s23, 3 }
  0x11   : > { %p1766_p6 = por %p185_p3, %p57_p0  ;;  %s1678_s29 = smov [#allocation7]  }
  0x12   : > { %s2102_s26 = scalar_select %p1761_p4, 1, 0 }
  0x13   : > { %s2103_s27 = scalar_select %p1766_p6, 1, 0 }
  0x14   : > { %p1771_p8 = pnand %p1087_p5, %p192_p7  ;;  %s204_s30 = sshll.u32 %s1678_s29, 4  ;;  %s1775_s30 = int_to_ptr.vmem [resolvable:$true] %s204_s30 }
  0x15   : > { %2104 = sst [smem:[#allocation17_spill]] %s2103_s27  ;;  %s1679_s7 = smov [#allocation8]  }
  0x16   : > { %s2105_s28 = scalar_select %p1771_p8, 1, 0 }
  0x17   : > { %p1281_p9 = pneg %p1771_p8  ;;  %s219_s8 = sshll.u32 %s1679_s7, 4  ;;  %s1786_s8 = int_to_ptr.vmem [resolvable:$true] %s219_s8 }
  0x18   : > { %s1680_s9 = smov [#allocation10]   ;;  %s2107_s2 = sld [smem:[#allocation19_spill]] }
  0x19   : > { %p1782_p11 = pnand %p1281_p9, %p2091_p1  ;;  %s1788_s10 = sshll.u32 %s1680_s9, 4  ;;  %s233_s10 = int_to_ptr.vmem [resolvable:$true] %s1788_s10 }
  0x1b   : > { %p1798_p13 = pneg %p1782_p11 }
  0x1e   : > { %s1438_s13 = scalar_lea.hbm %s2107_s2, 256 }
  0x1f   : > { %p1439_p12 = scmp.ne.s32.totalorder %s2107_s2, %s1438_s13  ;;  %p1445_p5 = scmp.lt.u32.totalorder %s1438_s13, %s2107_s2 }
  0x21   : > { %p1441_p0 = pnand %p1798_p13, %p1439_p12 }
  0x23   : > { %p1442_p3 = pneg %p1441_p0 }
  0x25   : > { %p1447_p7 = pnand %p1445_p5, %p1442_p3 }
  0x27   : > { %1450 = shalt.err (!%p1447_p7)
}
  0x28   : > { %s1451_s29 = scalar_lea.vmem %s1775_s30, 256  ;;  %p1459_p2 = scmp.lt.s32.totalorder %s1775_s30, %s1775_s30 }
  0x29   : > { %p1452_p9 = scmp.ne.s32.totalorder %s1775_s30, %s1451_s29  ;;  %p1460_p6 = scmp.lt.s32.totalorder %s1451_s29, %s1451_s29 }
  0x2b   : > { %p1454_p10 = pnand %p1452_p9, %p1798_p13  ;;  %p1461_p12 = por %p1460_p6, %p1459_p2 }
  0x2d   : > { %p1455_p1 = pneg %p1454_p10 }
  0x2f   : > { %p1462_p0 = pnand %p1461_p12, %p1455_p1 }
  0x31   : > { %1465 = shalt.err (!%p1462_p0)
}
  0x32   : > { %s2095_s7 = smov 128   ;;  %s2097_s9 = smov 8  }
  0x33   : > { %1284 = dma.hbm_to_vmem [thread:$0]  (!%p1782_p11), %s2107_s2, 256, %s1775_s30, [#allocation6], %s2095_s7, %s2095_s7, %s2097_s9  }
  0x34   : > { %s2109_s3 = sld [smem:[#allocation20_spill]] }
  0x3a   : > { %s1466_s15 = scalar_lea.hbm %s2109_s3, 2048 }
  0x3b   : > { %p1467_p1 = scmp.ne.s32.totalorder %s2109_s3, %s1466_s15  ;;  %p1473_p10 = scmp.lt.u32.totalorder %s1466_s15, %s2109_s3 }
  0x3d   : > { %p1469_p2 = pnand %p1467_p1, %p1798_p13 }
  0x3f   : > { %p1470_p6 = pneg %p1469_p2 }
  0x41   : > { %p1475_p3 = pnand %p1473_p10, %p1470_p6 }
  0x43   : > { %1478 = shalt.err (!%p1475_p3)
}
  0x44   : > { %s1479_s30 = scalar_lea.vmem %s1786_s8, 2048  ;;  %p1487_p12 = scmp.lt.s32.totalorder %s1786_s8, %s1786_s8 }
  0x45   : > { %p1480_p5 = scmp.ne.s32.totalorder %s1786_s8, %s1479_s30  ;;  %p1488_p0 = scmp.lt.s32.totalorder %s1479_s30, %s1479_s30 }
  0x47   : > { %p1482_p7 = pnand %p1480_p5, %p1798_p13  ;;  %p1489_p1 = por %p1488_p0, %p1487_p12 }
  0x49   : > { %p1483_p9 = pneg %p1482_p7 }
  0x4b   : > { %p1490_p2 = pnand %p1489_p1, %p1483_p9 }
  0x4d   : > { %1493 = shalt.err (!%p1490_p2)
}
  0x4e   : > { %1287 = dma.hbm_to_vmem [thread:$0]  (!%p1782_p11), %s2109_s3, 2048, %s1786_s8, [#allocation9], %s2095_s7, %s2095_s7, %s2097_s9  }
  0x4f   : > { %s1494_s14 = scalar_lea.hbm %s2089_s4, 256 }
  0x50   : > { %p1495_p6 = scmp.ne.s32.totalorder %s2089_s4, %s1494_s14  ;;  %p1501_p5 = scmp.lt.u32.totalorder %s1494_s14, %s2089_s4 }
  0x52   : > { %p1497_p10 = pnand %p1495_p6, %p1798_p13 }
  0x54   : > { %p1498_p3 = pneg %p1497_p10 }
  0x56   : > { %p1503_p7 = pnand %p1501_p5, %p1498_p3 }
  0x58   : > { %1506 = shalt.err (!%p1503_p7)
}
  0x59   : > { %s1507_s30 = scalar_lea.vmem %s233_s10, 256  ;;  %p1515_p1 = scmp.lt.s32.totalorder %s233_s10, %s233_s10 }
  0x5a   : > { %p1508_p9 = scmp.ne.s32.totalorder %s233_s10, %s1507_s30  ;;  %p1516_p2 = scmp.lt.s32.totalorder %s1507_s30, %s1507_s30 }
  0x5c   : > { %p1510_p12 = pnand %p1508_p9, %p1798_p13  ;;  %p1517_p4 = por %p1516_p2, %p1515_p1 }
  0x5e   : > { %p1511_p0 = pneg %p1510_p12 }
  0x60   : > { %p1518_p8 = pnand %p1517_p4, %p1511_p0 }
  0x62   : > { %1521 = shalt.err (!%p1518_p8)
}
  0x63   : > { %1290 = dma.hbm_to_vmem [thread:$0]  (!%p1782_p11), %s2089_s4, 256, %s233_s10, [#allocation9], %s2095_s7, %s2095_s7, %s2097_s9  }
  0x64   : > { %s44_s16 = sadd.s32 1, %s1664_s20  ;;  %s37_s6 = sadd.s32 1, %s1672_s22 }
  0x65   : > { %p51_p4 = scmp.ne.s32.totalorder %s1664_s20, %s1660_s19  ;;  %p39_p8 = scmp.ge.s32.totalorder %s37_s6, 2 }
  0x66   : > { %p52_p13 = scmp.eq.s32.totalorder %s1676_s23, 0  ;;  %p2110_p6 = scmp.eq.s32.totalorder %s1752_s24, 1 }
  0x67   : > { %p1305_p3 = scmp.lt.s32.totalorder %s1676_s23, 2  ;;  %s2131_s6 = smov (%p39_p8, %s37_s6), 0 }
  0x68   : > { %p1877_p10 = por %p2110_p6, %p51_p4  ;;  %p53_p5 = por %p52_p13, %p51_p4 }
  0x69   : > { %s246_s12 = sand.u32 1, %s1664_s20   ;;  %s41_s13 = ssub.s32 %s1672_s22, %s2131_s6 }
  0x6a   : > { %p42_p7 = scmp.eq.s32.totalorder %s41_s13, 0  ;;  %s1092_s10 = sshll.u32 %s246_s12, 5 }
  0x6b   : > { %s1144_s14 = sshll.u32 %s1672_s22, 9  ;;  %s2112_s0 = sld [smem:[#allocation18_spill]] }
  0x6c   : > { %s1889_s15 = scalar_select %p42_p7, %s1664_s20, %s44_s16  }
  0x6d   : > { %s250_s30 = scalar_lea.vmem [#allocation2], %s1092_s10  ;;  %p1900_p11 = pnand %p1305_p3, %p53_p5 }
  0x6e   : > { %s257_s8 = sshll.u32 %s250_s30, 4  ;;  %s1907_s17 = scalar_lea.hbm %s2086_s1, %s1144_s14  ;;  %s1896_s8 = int_to_ptr.vmem [resolvable:$true] %s257_s8 }
  0x6f   : > { %s271_s25 = scalar_lea.vmem [#allocation5], %s1092_s10  ;;  %s1911_s9 = scalar_lea.sflag [#allocation3], %s246_s12 }
  0x70   : > { %s1909_s7 = sshll.u32 %s271_s25, 4  ;;  %p1524_p12 = pneg %p1900_p11  ;;  %s1943_s7 = int_to_ptr.vmem [resolvable:$true] %s1909_s7 }
  0x71   : > { %s1894_s29 = scalar_lea.hbm %s2112_s0, %s1144_s14  ;;  %s1527_s16 = scalar_lea.hbm %s2112_s0, 1024 }
  0x72   : > { %s1522_s30 = scalar_lea.hbm %s1894_s29, 512  ;;  %p1528_p2 = scmp.lt.u32.totalorder %s1894_s29, %s2112_s0 }
  0x73   : > { %p1523_p9 = scmp.ne.s32.totalorder %s1894_s29, %s1522_s30  ;;  %p1529_p4 = scmp.lt.u32.totalorder %s1527_s16, %s1522_s30 }
  0x74   : > { %p1531_p13 = scmp.lt.u32.totalorder %s1522_s30, %s1894_s29 }
  0x75   : > { %p1525_p0 = pnand %p1524_p12, %p1523_p9  ;;  %p1530_p8 = por %p1529_p4, %p1528_p2 }
  0x77   : > { %p1526_p1 = pneg %p1525_p0  ;;  %p1532_p6 = por %p1531_p13, %p1530_p8 }
  0x79   : > { %p1533_p3 = pnand %p1532_p6, %p1526_p1 }
  0x7b   : > { %1536 = shalt.err (!%p1533_p3)
}
  0x7c   : > { %s1537_s12 = scalar_lea.vmem %s1896_s8, 512  ;;  %s1683_s2 = smov [#allocation2]  }
  0x7d   : > { %p1538_p5 = scmp.ne.s32.totalorder %s1896_s8, %s1537_s12  ;;  %s1542_s3 = sshll.u32 %s1683_s2, 4  ;;  %s1543_s3 = int_to_ptr.vmem [resolvable:$false] %s1542_s3 }
  0x7e   : > { %s1544_s10 = scalar_lea.vmem %s1543_s3, 1024  ;;  %p1545_p0 = scmp.lt.s32.totalorder %s1896_s8, %s1543_s3 }
  0x7f   : > { %p1540_p7 = pnand %p1538_p5, %p1524_p12  ;;  %p1546_p2 = scmp.lt.s32.totalorder %s1544_s10, %s1537_s12 }
  0x81   : > { %p1541_p9 = pneg %p1540_p7  ;;  %p1547_p4 = por %p1546_p2, %p1545_p0 }
  0x83   : > { %p1548_p8 = pnand %p1547_p4, %p1541_p9 }
  0x85   : > { %1551 = shalt.err (!%p1548_p8)
}
  0x86   : > { %s2114_s25 = smov 8   ;;  %s2115_s30 = smov 128  }
  0x87   : > { %1294 = dma.hbm_to_vmem [thread:$0]  (!%p1900_p11), %s1894_s29, 512, %s1896_s8, %s1911_s9, %s2115_s30, %s2115_s30, %s2114_s25  }
  0x88   : > { %s267_s16 = sand.u32 1, %s1676_s23   ;;  %s1552_s14 = scalar_lea.hbm %s1907_s17, 512 }
  0x89   : > { %s1946_s13 = scalar_lea.sflag [#allocation6], %s267_s16  ;;  %p1553_p1 = scmp.ne.s32.totalorder %s1907_s17, %s1552_s14 }
  0x8a   : > { %s1557_s3 = scalar_lea.hbm %s2086_s1, 1024  ;;  %p1558_p3 = scmp.lt.u32.totalorder %s1907_s17, %s2086_s1 }
  0x8b   : > { %p1555_p13 = pnand %p1553_p1, %p1524_p12  ;;  %p1559_p5 = scmp.lt.u32.totalorder %s1557_s3, %s1552_s14 }
  0x8c   : > { %p1561_p9 = scmp.lt.u32.totalorder %s1552_s14, %s1907_s17 }
  0x8d   : > { %p1556_p6 = pneg %p1555_p13  ;;  %p1560_p7 = por %p1559_p5, %p1558_p3 }
  0x8f   : > { %p1562_p0 = por %p1561_p9, %p1560_p7 }
  0x91   : > { %p1563_p2 = pnand %p1562_p0, %p1556_p6 }
  0x93   : > { %1566 = shalt.err (!%p1563_p2)
}
  0x94   : > { %s1567_s9 = scalar_lea.vmem %s1943_s7, 512  ;;  %s1684_s29 = smov [#allocation5]  }
  0x95   : > { %p1568_p4 = scmp.ne.s32.totalorder %s1943_s7, %s1567_s9  ;;  %s1572_s8 = sshll.u32 %s1684_s29, 4  ;;  %s1573_s8 = int_to_ptr.vmem [resolvable:$false] %s1572_s8 }
  0x96   : > { %s1574_s0 = scalar_lea.vmem %s1573_s8, 1024  ;;  %p1575_p13 = scmp.lt.s32.totalorder %s1943_s7, %s1573_s8 }
  0x97   : > { %p1570_p8 = pnand %p1568_p4, %p1524_p12  ;;  %p1576_p3 = scmp.lt.s32.totalorder %s1574_s0, %s1567_s9 }
  0x99   : > { %p1571_p1 = pneg %p1570_p8  ;;  %p1577_p5 = por %p1576_p3, %p1575_p13 }
  0x9b   : > { %p1578_p7 = pnand %p1577_p5, %p1571_p1 }
  0x9d   : > { %1581 = shalt.err (!%p1578_p7)
}
  0x9e   : > { %1297 = dma.hbm_to_vmem [thread:$0]  (!%p1900_p11), %s1907_s17, 512, %s1943_s7, %s1946_s13, %s2115_s30, %s2115_s30, %s2114_s25  }
  0x9f   : > { %p2116_p12 = scmp.ne.s32.totalorder %s2105_s28, 0 }
  0xa0   : > { %s1978_s16 = sand.u32 (!%p2116_p12), 1, %s1660_s19   ;;  %p2117_p6 = scmp.ne.s32.totalorder (!%p2116_p12), %s2102_s26, 0 }
  0xa1   : > { %291 = sbr.rel (%p2116_p12) target bundleno = 1122 (0x462), region = 40  ;;  %s1099_s14 = sshll.u32 (!%p2116_p12), %s1978_s16, 5 }
  0xa2   : > { %s294_s12 = scalar_lea.sflag (!%p2116_p12), [#allocation3], %s1978_s16  ;;  %s297_s2 = scalar_lea.vmem (!%p2116_p12), [#allocation2], %s1099_s14 }
  0xa8   : > { %1635 = dma.done.wait (%p2117_p6), %s294_s12, 512  }
  0xa9   : > { %1637 = vsyncadd (%p2117_p6), %s294_s12, 4294966784  ;;  %s302_s7 = sand.u32 1, %s1752_s24   ;;  %s306_s28 = scalar_lea.vmem [#allocation5], %s1099_s14 }
  0xaa   : > { %s303_s27 = scalar_lea.sflag [#allocation6], %s302_s7 }
  0xab   : > { %1639 = dma.done.wait (%p2117_p6), %s303_s27, 512  }
  0xac   : > { %1641 = vsyncadd (%p2117_p6), %s303_s27, 4294966784  ;;  %p2118_p11 = scmp.eq.s32.totalorder %s1752_s24, 0 }
  0xae   : > { %1643 = dma.done.wait (%p2118_p11), [#allocation6], 256   ;;  %p2119_p9 = pmov %p2118_p11 }
  0xb0   : > { %1645 = vsyncadd (%p2119_p9), [#allocation6], 4294967040  ;;  %p2120_p0 = pmov %p2119_p9 }
  0xb2   : > { %1647 = dma.done.wait (%p2120_p0), [#allocation9], 2304   ;;  %p2121_p2 = pmov %p2120_p0 }
  0xb3   : > { %v1685_v0 = vmov 0.0|0.0   ;;  %vm1686_vm0 = vmmov 0   ;;  %v1687_v1 = vmov 0.0   ;;  %v377_v2 = vld [vmem:[%s297_s2] sm:$0xff]  ;;  %v378_v3 = vld [vmem:[%s297_s2 + $0x8] sm:$0xff]  ;;  %v379_v4 = vld [vmem:[%s297_s2 + $0x10] sm:$0xff] }
  0xb4   : > { %1649 = vsyncadd (%p2121_p2), [#allocation9], 4294964992  ;;  %1251 = vmatprep.subr.bf16.mxu0 %v1685_v0  ;;  %1191 = vmatprep.mubr.msk.f32.mxu0 %vm1686_vm0, %v1687_v1  ;;  %v1252_v5 = vpack.c.bf16 %v378_v3, %v377_v2  ;;  %v380_v6 = vld [vmem:[%s297_s2 + $0x18] sm:$0xff]  ;;  %v381_v7 = vld [vmem:[%s306_s28] sm:$0xff]  ;;  %vm385_vm1 = vcmask 261120   ;;  %vm564_vm2 = vcmask 64512  }
  0xb5   : > { %1257 = vmatprep.subr.bf16.mxu1 %v1685_v0  ;;  %1202 = vmatprep.mubr.msk.f32.mxu1 %vm1686_vm0, %v1687_v1  ;;  %v382_v8 = vld [vmem:[%s306_s28 + $0x8] sm:$0xff]  ;;  %v383_v9 = vld [vmem:[%s306_s28 + $0x10] sm:$0xff]  ;;  %v384_v10 = vld [vmem:[%s306_s28 + $0x18] sm:$0xff]  ;;  %v1255_v11 = vpack.c.bf16 %v380_v6, %v379_v4  ;;  %s1104_s24 = sshll.u32 %s1978_s16, 4  ;;  %s1146_s26 = sshll.u32 %s1668_s21, 8 }
  0xb6   : > { %1253 = vmatpush3.bf16.msra.mxu0 %v1252_v5  ;;  %v1258_v12 = vpack.c.bf16 %v382_v8, %v381_v7  ;;  %v1261_v13 = vpack.c.bf16 %v384_v10, %v383_v9  ;;  %v351_v14 = vld [vmem:[#allocation7] sm:$0xff]  ;;  %v352_v15 = vld [vmem:[#allocation7 + $0x8] sm:$0xff]  ;;  %v354_v36 = vld [vmem:[#allocation8 + $0x8] sm:$0xff]  ;;  %s349_s17 = scalar_lea.vmem [#allocation11], %s1104_s24  ;;  %s2034_s3 = scalar_lea.hbm %s2090_s5, %s1146_s26 }
  0xb7   : > { %1254 = vmatprep.subr.bf16.mxu0 %v1685_v0  ;;  %v353_v37 = vld [vmem:[#allocation8] sm:$0xff]  ;;  %v356_v44 = vld [vmem:[#allocation8 + $0x18] sm:$0xff]  ;;  %v355_v45 = vld [vmem:[#allocation8 + $0x10] sm:$0xff]  ;;  %s947_s25 = sshll.u32 %s349_s17, 4  ;;  %s933_s10 = scalar_lea.sflag [#allocation4], %s1978_s16  ;;  %s2036_s25 = int_to_ptr.vmem [resolvable:$true] %s947_s25 }
  0xb8   : > { %1259 = vmatpush3.bf16.msra.mxu1 %v1258_v12  ;;  %v358_v52 = vld [vmem:[#allocation8 + $0x28] sm:$0xff]  ;;  %v357_v54 = vld [vmem:[#allocation8 + $0x20] sm:$0xff]  ;;  %v359_v3 = vld [vmem:[#allocation8 + $0x30] sm:$0xff]  ;;  %s1582_s9 = scalar_lea.vmem %s2036_s25, 256  ;;  %s1688_s21 = smov [#allocation11]  }
  0xb9   : > { %1260 = vmatprep.subr.bf16.mxu1 %v1685_v0  ;;  %v360_v0 = vld [vmem:[#allocation8 + $0x38] sm:$0xff]  ;;  %p1583_p4 = scmp.ne.s32.totalorder %s2036_s25, %s1582_s9  ;;  %s1586_s29 = sshll.u32 %s1688_s21, 4  ;;  %s1587_s29 = int_to_ptr.vmem [resolvable:$false] %s1586_s29 }
  0xba   : > { %1256 = vmatpush3.bf16.msra.mxu0 %v1255_v11  ;;  %s1588_s8 = scalar_lea.vmem %s1587_s29, 512  ;;  %p1589_p13 = scmp.lt.s32.totalorder %s2036_s25, %s1587_s29 }
  0xbb   : > { %p1584_p8 = pnand %p1583_p4, %p1877_p10  ;;  %p1590_p3 = scmp.lt.s32.totalorder %s1588_s8, %s1582_s9 }
  0xbc   : > { %1262 = vmatpush3.bf16.msra.mxu1 %v1261_v13 }
  0xbd   : > { %1192 = vmatmul.mubr.msk.f32.vlgmr.msra.gmra.mrb[0].mxu0 %vm385_vm1, %v351_v14  ;;  %1231 = vmatprep.subr.bf16.mxu1 %v1687_v1  ;;  %p1585_p1 = pneg %p1584_p8  ;;  %p1591_p5 = por %p1590_p3, %p1589_p13 }
  0xbf   : > { %1203 = vmatmul.mubr.msk.f32.vlgmr.msra.gmra.mrb[0].mxu1 %vm385_vm1, %v352_v15  ;;  %v362_v15 = vld [vmem:[#allocation8 + $0x48] sm:$0xff]  ;;  %p1592_p7 = pnand %p1591_p5, %p1585_p1 }
  0xc0   : > { %1247 = vmatprep.mubr.msk.bf16.mxu1 %vm1686_vm0, %v1687_v1 }
 0x190   : > { %v455_v16 = vpop.f32.mrb[0].mxu0 }
 0x191   : > { %532 = vxpose.xlu0.b32.start.end [1/1] (short) %v455_v16, 128  ;;  %v1193_v17 = vpop.f32.mrb[1].mxu0 }
 0x192   : > { %v528_v18 = vpop.f32.mrb[0].mxu1 }
 0x193   : > { %1205 = vmatprep.subr.mxu0 %v528_v18  ;;  %v1204_v19 = vpop.f32.mrb[1].mxu1 }
 0x194   : > { %1206 = vmatpush3.msra.mxu0 %v528_v18  ;;  %v361_v18 = vld [vmem:[#allocation8 + $0x40] sm:$0xff] }
 0x211   : > { %v548_v20 = vpop.trf.xlu0 }
 0x212   : > { %1207 = vmatprep.mubr.msk.f32.mxu0 %vm564_vm2, %v548_v20 }
 0x215   : > { %v549_v21 = vpop.trf.xlu0 }
 0x216   : > { %1208 = vmatmul.mubr.msk.f32.vlgmr.msra.gmra.mrb[2].mxu0 %vm564_vm2, %v549_v21 }
 0x219   : > { %v550_v22 = vpop.trf.xlu0 }
 0x21a   : > { %1210 = vmatprep.mubr.msk.f32.mxu0 %vm564_vm2, %v550_v22 }
 0x21d   : > { %v551_v23 = vpop.trf.xlu0 }
 0x21e   : > { %1211 = vmatmul.mubr.msk.f32.gmra.mrb[4].mxu0 %vm564_vm2, %v551_v23 }
 0x221   : > { %v552_v24 = vpop.trf.xlu0 }
 0x222   : > { %1213 = vmatprep.mubr.msk.f32.mxu0 %vm564_vm2, %v552_v24 }
 0x225   : > { %v553_v25 = vpop.trf.xlu0 }
 0x226   : > { %1214 = vmatmul.mubr.msk.f32.gmra.mrb[6].mxu0 %vm564_vm2, %v553_v25 }
 0x229   : > { %v554_v26 = vpop.trf.xlu0 }
 0x22a   : > { %1216 = vmatprep.mubr.msk.f32.mxu0 %vm564_vm2, %v554_v26 }
 0x22d   : > { %v555_v27 = vpop.trf.xlu0 }
 0x22e   : > { %1217 = vmatmul.mubr.msk.f32.gmra.mrb[8].mxu0 %vm564_vm2, %v555_v27 }
 0x231   : > { %v556_v28 = vpop.trf.xlu0 }
 0x232   : > { %1219 = vmatprep.mubr.msk.f32.mxu0 %vm564_vm2, %v556_v28 }
 0x235   : > { %v557_v29 = vpop.trf.xlu0 }
 0x236   : > { %1220 = vmatmul.mubr.msk.f32.gmra.mrb[10].mxu0 %vm564_vm2, %v557_v29 }
 0x239   : > { %v558_v30 = vpop.trf.xlu0 }
 0x23a   : > { %1222 = vmatprep.mubr.msk.f32.mxu0 %vm564_vm2, %v558_v30  ;;  %v364_v30 = vld [vmem:[#allocation8 + $0x58] sm:$0xff] }
 0x23d   : > { %v559_v31 = vpop.trf.xlu0 }
 0x23e   : > { %1223 = vmatmul.mubr.msk.f32.gmra.mrb[12].mxu0 %vm564_vm2, %v559_v31 }
 0x241   : > { %v560_v32 = vpop.trf.xlu0 }
 0x242   : > { %1225 = vmatprep.mubr.msk.f32.mxu0 %vm564_vm2, %v560_v32 }
 0x245   : > { %v561_v33 = vpop.trf.xlu0 }
 0x246   : > { %1226 = vmatmul.mubr.msk.f32.gmra.mrb[14].mxu0 %vm564_vm2, %v561_v33  ;;  %v363_v33 = vld [vmem:[#allocation8 + $0x50] sm:$0xff] }
 0x249   : > { %v562_v34 = vpop.trf.xlu0 }
 0x24a   : > { %1228 = vmatprep.mubr.msk.f32.mxu0 %vm564_vm2, %v562_v34 }
 0x24d   : > { %v563_v35 = vpop.trf.xlu0 }
 0x24e   : > { %1229 = vmatmul.mubr.msk.f32.gmra.mrb[16].mxu0 %vm564_vm2, %v563_v35 }
 0x2e9   : > { %v1209_v38 = vpop.f32.mrb[2].mxu0 }
 0x2ea   : > { %v685_v39 = vadd.f32 %v1209_v38, %v354_v36  ;;  %v679_v40 = vpop.f32.mrb[3].mxu0 }
 0x2eb   : > { %v680_v41 = vadd.f32 %v679_v40, %v353_v37 }
 0x2ec   : > { %v1124_v42 = vmul.f32 -1.442695, %v685_v39 }
 0x2ed   : > { %v1123_v43 = vmul.f32 -1.442695, %v680_v41 }
 0x2ee   : > { %1368 = vpow2.f32 %v1124_v42 }
 0x2ef   : > { %1370 = vpow2.f32 %v1123_v43 }
 0x2f1   : > { %v1212_v46 = vpop.f32.mrb[4].mxu0 }
 0x2f2   : > { %v695_v47 = vadd.f32 %v1212_v46, %v356_v44  ;;  %v689_v48 = vpop.f32.mrb[5].mxu0 }
 0x2f3   : > { %v690_v49 = vadd.f32 %v689_v48, %v355_v45  ;;  %v366_v45 = vld [vmem:[#allocation8 + $0x68] sm:$0xff]  ;;  %v365_v48 = vld [vmem:[#allocation8 + $0x60] sm:$0xff] }
 0x2f4   : > { %v1126_v50 = vmul.f32 -1.442695, %v695_v47 }
 0x2f5   : > { %v1125_v51 = vmul.f32 -1.442695, %v690_v49 }
 0x2f6   : > { %1372 = vpow2.f32 %v1126_v50 }
 0x2f7   : > { %1374 = vpow2.f32 %v1125_v51 }
 0x2f8   : > { %v1369_v53 = vpop.eup %1368 }
 0x2f9   : > { %v1371_v55 = vpop.eup %1370  ;;  %v807_v56 = vadd.f32 1.0, %v1369_v53  ;;  %v1215_v57 = vpop.f32.mrb[6].mxu0 }
 0x2fa   : > { %v806_v58 = vadd.f32 1.0, %v1371_v55  ;;  %v705_v59 = vadd.f32 %v1215_v57, %v358_v52  ;;  %v699_v60 = vpop.f32.mrb[7].mxu0 }
 0x2fb   : > { %1376 = vrcp.f32 %v807_v56  ;;  %v700_v61 = vadd.f32 %v699_v60, %v357_v54  ;;  %v368_v60 = vld [vmem:[#allocation8 + $0x78] sm:$0xff] }
 0x2fc   : > { %1378 = vrcp.f32 %v806_v58  ;;  %v1128_v62 = vmul.f32 -1.442695, %v705_v59 }
 0x2fd   : > { %v1127_v63 = vmul.f32 -1.442695, %v700_v61 }
 0x2fe   : > { %1380 = vpow2.f32 %v1128_v62 }
 0x2ff   : > { %1382 = vpow2.f32 %v1127_v63  ;;  %v367_v63 = vld [vmem:[#allocation8 + $0x70] sm:$0xff] }
 0x300   : > { %v1373_v2 = vpop.eup %1372 }
 0x301   : > { %v1375_v4 = vpop.eup %1374  ;;  %v809_v5 = vadd.f32 1.0, %v1373_v2  ;;  %v1218_v6 = vpop.f32.mrb[8].mxu0 }
 0x302   : > { %v808_v7 = vadd.f32 1.0, %v1375_v4  ;;  %v715_v8 = vadd.f32 %v1218_v6, %v360_v0  ;;  %v709_v9 = vpop.f32.mrb[9].mxu0 }
 0x303   : > { %1384 = vrcp.f32 %v809_v5  ;;  %v710_v10 = vadd.f32 %v709_v9, %v359_v3 }
 0x304   : > { %1386 = vrcp.f32 %v808_v7  ;;  %v1130_v11 = vmul.f32 -1.442695, %v715_v8 }
 0x305   : > { %v1377_v12 = vpop.eup %1376  ;;  %v1129_v13 = vmul.f32 -1.442695, %v710_v10 }
 0x306   : > { %v1379_v14 = vpop.eup %1378  ;;  %1388 = vpow2.f32 %v1130_v11 }
 0x307   : > { %1390 = vpow2.f32 %v1129_v13  ;;  %v854_v16 = vpack.c.bf16 %v1377_v12, %v1379_v14 }
 0x308   : > { %v1381_v17 = vpop.eup %1380 }
 0x309   : > { %v1383_v19 = vpop.eup %1382  ;;  %v811_v20 = vadd.f32 1.0, %v1381_v17  ;;  %v1221_v21 = vpop.f32.mrb[10].mxu0  ;;  %1232 = vmatpush3.bf16.msra.mxu1 %v854_v16 }
 0x30a   : > { %v810_v22 = vadd.f32 1.0, %v1383_v19  ;;  %v725_v23 = vadd.f32 %v1221_v21, %v362_v15  ;;  %v719_v24 = vpop.f32.mrb[11].mxu0  ;;  %1233 = vmatprep.subr.bf16.mxu1 %v1687_v1 }
 0x30b   : > { %1392 = vrcp.f32 %v811_v20  ;;  %v720_v25 = vadd.f32 %v719_v24, %v361_v18 }
 0x30c   : > { %1394 = vrcp.f32 %v810_v22  ;;  %v1132_v26 = vmul.f32 -1.442695, %v725_v23 }
 0x30d   : > { %v1385_v27 = vpop.eup %1384  ;;  %v1131_v28 = vmul.f32 -1.442695, %v720_v25 }
 0x30e   : > { %v1387_v29 = vpop.eup %1386  ;;  %1396 = vpow2.f32 %v1132_v26 }
 0x30f   : > { %1398 = vpow2.f32 %v1131_v28  ;;  %v855_v31 = vpack.c.bf16 %v1385_v27, %v1387_v29  ;;  %v369_v28 = vld [vmem:[#allocation10] sm:$0xff]  ;;  %v370_v29 = vld [vmem:[#allocation10 + $0x8] sm:$0xff] }
 0x310   : > { %v1389_v32 = vpop.eup %1388 }
 0x311   : > { %v1391_v34 = vpop.eup %1390  ;;  %v813_v35 = vadd.f32 1.0, %v1389_v32  ;;  %v1224_v36 = vpop.f32.mrb[12].mxu0  ;;  %1234 = vmatpush3.bf16.msra.mxu1 %v855_v31  ;;  %v371_v32 = vpack.c.bf16 %v370_v29, %v369_v28 }
 0x312   : > { %v812_v37 = vadd.f32 1.0, %v1391_v34  ;;  %v735_v38 = vadd.f32 %v1224_v36, %v364_v30  ;;  %v729_v39 = vpop.f32.mrb[13].mxu0  ;;  %1235 = vmatprep.subr.bf16.mxu1 %v1687_v1 }
 0x313   : > { %1400 = vrcp.f32 %v813_v35  ;;  %v730_v40 = vadd.f32 %v729_v39, %v363_v33 }
 0x314   : > { %1402 = vrcp.f32 %v812_v37  ;;  %v1134_v41 = vmul.f32 -1.442695, %v735_v38 }
 0x315   : > { %v1393_v42 = vpop.eup %1392  ;;  %v1133_v43 = vmul.f32 -1.442695, %v730_v40 }
 0x316   : > { %v1395_v44 = vpop.eup %1394  ;;  %1404 = vpow2.f32 %v1134_v41 }
 0x317   : > { %1406 = vpow2.f32 %v1133_v43  ;;  %v856_v46 = vpack.c.bf16 %v1393_v42, %v1395_v44 }
 0x318   : > { %v1397_v47 = vpop.eup %1396 }
 0x319   : > { %v1399_v49 = vpop.eup %1398  ;;  %v815_v50 = vadd.f32 1.0, %v1397_v47  ;;  %v1227_v51 = vpop.f32.mrb[14].mxu0  ;;  %1236 = vmatpush3.bf16.msra.mxu1 %v856_v46 }
 0x31a   : > { %v814_v52 = vadd.f32 1.0, %v1399_v49  ;;  %v745_v53 = vadd.f32 %v1227_v51, %v366_v45  ;;  %v739_v54 = vpop.f32.mrb[15].mxu0  ;;  %1237 = vmatprep.subr.bf16.mxu1 %v1687_v1 }
 0x31b   : > { %1408 = vrcp.f32 %v815_v50  ;;  %v740_v55 = vadd.f32 %v739_v54, %v365_v48 }
 0x31c   : > { %1410 = vrcp.f32 %v814_v52  ;;  %v1136_v56 = vmul.f32 -1.442695, %v745_v53 }
 0x31d   : > { %v1401_v57 = vpop.eup %1400  ;;  %v1135_v58 = vmul.f32 -1.442695, %v740_v55 }
 0x31e   : > { %v1403_v59 = vpop.eup %1402  ;;  %1412 = vpow2.f32 %v1136_v56 }
 0x31f   : > { %1414 = vpow2.f32 %v1135_v58  ;;  %v857_v61 = vpack.c.bf16 %v1401_v57, %v1403_v59 }
 0x320   : > { %v1405_v62 = vpop.eup %1404 }
 0x321   : > { %v1407_v0 = vpop.eup %1406  ;;  %v817_v2 = vadd.f32 1.0, %v1405_v62  ;;  %v1230_v3 = vpop.f32.mrb[16].mxu0  ;;  %1238 = vmatpush3.bf16.msra.mxu1 %v857_v61 }
 0x322   : > { %v816_v4 = vadd.f32 1.0, %v1407_v0  ;;  %v755_v5 = vadd.f32 %v1230_v3, %v368_v60  ;;  %v749_v6 = vpop.f32.mrb[17].mxu0  ;;  %1239 = vmatprep.subr.bf16.mxu1 %v1687_v1 }
 0x323   : > { %1416 = vrcp.f32 %v817_v2  ;;  %v750_v7 = vadd.f32 %v749_v6, %v367_v63 }
 0x324   : > { %1418 = vrcp.f32 %v816_v4  ;;  %v1138_v8 = vmul.f32 -1.442695, %v755_v5 }
 0x325   : > { %v1409_v9 = vpop.eup %1408  ;;  %v1137_v10 = vmul.f32 -1.442695, %v750_v7 }
 0x326   : > { %v1411_v11 = vpop.eup %1410  ;;  %1420 = vpow2.f32 %v1138_v8 }
 0x327   : > { %1422 = vpow2.f32 %v1137_v10  ;;  %v858_v12 = vpack.c.bf16 %v1409_v9, %v1411_v11 }
 0x328   : > { %v1413_v13 = vpop.eup %1412 }
 0x329   : > { %v1415_v14 = vpop.eup %1414  ;;  %v819_v15 = vadd.f32 1.0, %v1413_v13  ;;  %1240 = vmatpush3.bf16.msra.mxu1 %v858_v12 }
 0x32a   : > { %v818_v16 = vadd.f32 1.0, %v1415_v14  ;;  %1241 = vmatprep.subr.bf16.mxu1 %v1687_v1 }
 0x32b   : > { %1424 = vrcp.f32 %v819_v15 }
 0x32c   : > { %1426 = vrcp.f32 %v818_v16 }
 0x32d   : > { %v1417_v17 = vpop.eup %1416 }
 0x32e   : > { %v1419_v18 = vpop.eup %1418 }
 0x32f   : > { %v859_v19 = vpack.c.bf16 %v1417_v17, %v1419_v18 }
 0x330   : > { %v1421_v20 = vpop.eup %1420 }
 0x331   : > { %v1423_v21 = vpop.eup %1422  ;;  %v821_v22 = vadd.f32 1.0, %v1421_v20  ;;  %1242 = vmatpush3.bf16.msra.mxu1 %v859_v19 }
 0x332   : > { %v820_v23 = vadd.f32 1.0, %v1423_v21  ;;  %1243 = vmatprep.subr.bf16.mxu1 %v1687_v1 }
 0x333   : > { %1428 = vrcp.f32 %v821_v22 }
 0x334   : > { %1430 = vrcp.f32 %v820_v23 }
 0x335   : > { %v1425_v24 = vpop.eup %1424 }
 0x336   : > { %v1427_v25 = vpop.eup %1426 }
 0x337   : > { %v860_v26 = vpack.c.bf16 %v1425_v24, %v1427_v25 }
 0x339   : > { %1244 = vmatpush3.bf16.msra.mxu1 %v860_v26 }
 0x33a   : > { %1245 = vmatprep.subr.bf16.mxu1 %v1687_v1 }
 0x33d   : > { %v1429_v27 = vpop.eup %1428 }
 0x33e   : > { %v1431_v30 = vpop.eup %1430 }
 0x33f   : > { %v861_v31 = vpack.c.bf16 %v1429_v27, %v1431_v30 }
 0x341   : > { %1246 = vmatpush3.bf16.msra.mxu1 %v861_v31 }
 0x344   : > { %1248 = vmatmul.mubr.bf16.vlgmr.msra.gmra.mrb[4].mxu1 %v371_v32 }
 0x417   : > { %v896_v33 = vpop.f32.mrb[4].mxu1 }
 0x418   : > { %v1249_v34 = vpop.f32.mrb[5].mxu1 }
 0x419   : > { %v899_v35 = vpop.f32.mrb[6].mxu1 }
 0x41a   : > { %v905_v36 = vmax.f32 %v896_v33, %v899_v35  ;;  %v1250_v37 = vpop.f32.mrb[7].mxu1 }
 0x41c   : > { %v906_v38 = vrot.slane %v905_v36, 4 }
 0x41e   : > { %v907_v39 = vmax.f32 %v905_v36, %v906_v38 }
 0x420   : > { %v908_v40 = vrot.slane %v907_v39, 2 }
 0x422   : > { %v909_v41 = vmax.f32 %v907_v39, %v908_v40 }
 0x424   : > { %v910_v42 = vrot.slane %v909_v41, 1 }
 0x426   : > { %v911_v43 = vmax.f32 %v909_v41, %v910_v42 }
 0x428   : > { %v912_v1 = vsub.f32 %v896_v33, %v911_v43  ;;  %v913_v44 = vsub.f32 %v899_v35, %v911_v43 }
 0x42a   : > { %v914_v45 = vmul.f32 1.442695, %v912_v1  ;;  %v916_v46 = vmul.f32 1.442695, %v913_v44 }
 0x42c   : > { %1432 = vpow2.f32 %v914_v45 }
 0x42d   : > { %1434 = vpow2.f32 %v916_v46 }
 0x436   : > { %v1433_v47 = vpop.eup %1432 }
 0x437   : > { %v1435_v48 = vpop.eup %1434 }
 0x438   : > { %v920_v49 = vadd.f32 %v1435_v48, %v1433_v47 }
 0x43a   : > { %v921_v50 = vrot.slane %v920_v49, 4 }
 0x43c   : > { %v922_v51 = vadd.f32 %v921_v50, %v920_v49 }
 0x43e   : > { %v923_v52 = vrot.slane %v922_v51, 2 }
 0x440   : > { %v924_v53 = vadd.f32 %v923_v52, %v922_v51 }
 0x442   : > { %v925_v54 = vrot.slane %v924_v53, 1 }
 0x444   : > { %v926_v55 = vadd.f32 %v925_v54, %v924_v53 }
 0x446   : > { %1436 = vrcp.f32 %v926_v55 }
 0x450   : > { %v1437_v56 = vpop.eup %1436 }
 0x451   : > { %v928_v57 = vmul.f32 %v1437_v56, %v1433_v47  ;;  %v929_v58 = vmul.f32 %v1437_v56, %v1435_v48 }
 0x453   : > { %930 = vst [vmem:[%s349_s17] sm:$0xff] %v928_v57  ;;  %931 = vst [vmem:[%s349_s17 + $0x8] sm:$0xff] %v929_v58 }
 0x454   : > { %1595 = shalt.err (!%p1592_p7)
}
 0x455   : > { %s1596_s0 = scalar_lea.hbm %s2034_s3, 256  ;;  %s1600_s2 = scalar_lea.hbm %s2090_s5, 512 }
 0x456   : > { %p1597_p12 = scmp.ne.s32.totalorder %s2034_s3, %s1596_s0  ;;  %p1601_p9 = scmp.lt.u32.totalorder %s2034_s3, %s2090_s5 }
 0x457   : > { %p1602_p0 = scmp.lt.u32.totalorder %s1600_s2, %s1596_s0  ;;  %p1604_p4 = scmp.lt.u32.totalorder %s1596_s0, %s2034_s3 }
 0x458   : > { %p1598_p6 = pnand %p1597_p12, %p1877_p10 }
 0x459   : > { %p1603_p2 = por %p1602_p0, %p1601_p9 }
 0x45a   : > { %p1599_p11 = pneg %p1598_p6 }
 0x45b   : > { %p1605_p8 = por %p1604_p4, %p1603_p2 }
 0x45d   : > { %p1606_p1 = pnand %p1605_p8, %p1599_p11 }
 0x45f   : > { %1609 = shalt.err (!%p1606_p1)
}
 0x460   : > { %s1689_s28 = smov 128   ;;  %s1690_s24 = smov 8  }
 0x461   : > { %1279 = dma.vmem_to_hbm [thread:$0]  (%p1877_p10), %s2036_s25, 256, %s2034_s3, %s933_s10, %s1689_s28, %s1689_s28, %s1690_s24  }
 0x462 PF: > { %s2122_s26 = sld [smem:[#allocation17_spill]]  ;;  %s962_s17 = sand.u32 1, %s1656_s18  }
 0x463   : > { %p2124_p3 = scmp.ge.s32.totalorder %s1676_s23, 2  ;;  %s963_s30 = scalar_lea.sflag [#allocation4], %s962_s17 }
 0x468   : > { %p2123_p13 = scmp.ne.s32.totalorder %s2122_s26, 0 }
 0x46a   : > { %p1299_p5 = pnand %p2124_p3, %p2123_p13 }
 0x46c   : > { %1651 = dma.done.wait (!%p1299_p5), %s963_s30, 256  }
 0x46d   : > { %1653 = vsyncadd (!%p1299_p5), %s963_s30, 4294967040  ;;  %s25_s23 = sadd.s32 1, %s1676_s23   ;;  %s2125_s18 = smov %s1660_s19 }
 0x46e   : > { %p22_p7 = scmp.ge.s32.totalorder %s25_s23, 4   ;;  %s2126_s19 = smov %s1664_s20 }
 0x46f   : > { %s2127_s20 = smov %s1889_s15  ;;  %s2128_s21 = smov %s1672_s22 }
 0x470   : > { %s2129_s22 = smov %s2131_s6  ;;  %24 = sbr.rel (!%p22_p7) target bundleno = 13 (0xd), region = 111 }
 0x477   :  { %968 = vsyncpa [#allocation3], 1 }
 0x478   :  { %970 = vsyncpa [#allocation3 + $0x1], 1 }
 0x479   :  { %971 = vsyncpa [#allocation6], 1 }
 0x47a   :  { %973 = vsyncpa [#allocation6 + $0x1], 1 }
 0x47b   :  { %974 = vsyncpa [#allocation9], 1 }
 0x47c   :  { %975 = vsyncpa [#allocation4], 1 }
 0x47d   :  { %977 = vsyncpa [#allocation4 + $0x1], 1 }

</bundles_post_ra>
